<compile_context>
chip_gen: v5e
topology: v5e:2x2
jax: 0.10.0
libtpu: 0.0.40
codegen_flags: <defaults>
</compile_context>

<pallas_src>
import jax
import jax.numpy as jnp
from jax.experimental import pallas as pl
from jax.experimental.pallas import tpu as pltpu

BN_EPS = 1e-5  # PyTorch BatchNorm2d default


# --------------------------------------------------------------------------
# Pass 1: fused im2col conv (K = 9*Cin) + single-pass per-tile BN partials
# --------------------------------------------------------------------------
def _conv_stats_kernel(xp_ref, w_ref, conv_ref, stats_ref):
    # xp_ref   : (1, Hp, Wp, Cin)  padded NHWC sample (compute dtype),
    #            resident across the spatial (t) grid axis
    # w_ref    : (Cout, 9*Cin)     conv weight, K ordered (dy, dx, ci)
    # conv_ref : (1, Cout, TH*W)   lane-dense conv output tile (compute dtype)
    # stats_ref: (1, 1, 2, Cout)   per-tile [sum; sum_of_squares], Cout on lanes
    _, Hp, Wp, Cin = xp_ref.shape
    W = Wp - 2
    thw = conv_ref.shape[-1]
    TH = thw // W

    t = pl.program_id(1)
    row0 = pl.multiple_of(t * TH, TH)

    # im2col: (TH*W, 9*Cin) patch matrix for this row tile.  No transpose is
    # needed later: the matmul below contracts the last axis directly.
    parts = []
    for dy in range(3):
        for dx in range(3):
            blk = xp_ref[0, pl.ds(row0 + dy, TH), pl.ds(dx, W), :]  # (TH, W, Cin)
            parts.append(blk.reshape(TH * W, Cin))
    patches = jnp.concatenate(parts, axis=1)                         # (TH*W, 9*Cin)

    # One fused MXU matmul: contraction over the shared last axis (9*Cin) of
    # both operands (no patches.T materialization); f32 accumulation.
    dn = (((1,), (1,)), ((), ()))
    acc = jax.lax.dot_general(w_ref[...], patches, dn,
                              preferred_element_type=jnp.float32)    # (Cout, THW) f32

    conv_ref[0] = acc.astype(conv_ref.dtype)

    # Single-pass BN partial statistics (f32), lane-dense on Cout: ones-row
    # matmuls produce (1, Cout) row sums directly (no column->row relayout).
    ones_row = jnp.ones((1, thw), jnp.float32)
    s1 = jax.lax.dot_general(ones_row, acc, dn,
                             preferred_element_type=jnp.float32)     # (1, Cout)
    s2 = jax.lax.dot_general(ones_row, acc * acc, dn,
                             preferred_element_type=jnp.float32)     # (1, Cout)
    stats_ref[0, 0] = jnp.concatenate([s1, s2], axis=0)              # (2, Cout)


# --------------------------------------------------------------------------
# Pass 2: per-sample folded scale/shift (BN + conditional affine) + ReLU
# --------------------------------------------------------------------------
def _bn_act_kernel(conv_ref, scale_ref, shift_ref, o_ref):
    # conv_ref : (1, Cout, TH*W) compute dtype
    # scale_ref/shift_ref : (1, Cout, 1) f32  (gamma*rstd, beta - mean*gamma*rstd)
    # o_ref    : (1, Cout, TH*W) output dtype
    x = conv_ref[0].astype(jnp.float32)        # single upcast; VPU math stays f32
    out = x * scale_ref[0] + shift_ref[0]
    o_ref[0] = jnp.maximum(out, 0.0).astype(o_ref.dtype)


# --------------------------------------------------------------------------
# Wrapper helpers
# --------------------------------------------------------------------------
def _vmem_limit_bytes():
    """Generation-aware scoped-VMEM limit: ~3/4 of physical, capped at 96 MiB
    (=> ~96 MiB on v5e/v6e's 128 MiB VMEM, ~48 MiB on v7x's 64 MiB VMEM)."""
    cap = 128 * 1024 * 1024
    try:
        info = pltpu.get_tpu_info()
        cap = int(getattr(info, "vmem_capacity_bytes", cap) or cap)
    except Exception:
        pass
    return int(min(cap * 3 // 4, 96 * 1024 * 1024))


def _pick_tile_h(H, W, Cout, Cin, itemsize, vmem_limit):
    """Largest divisor of H whose flattened tile (tile_h*W) is lane-dense
    (multiple of 128) and keeps the per-step tile buffers within ~1/4 of the
    VMEM budget (conv tile in/out double-buffered + f32 math copy + im2col
    temp).  Falls back to the smallest lane-dense divisor, else full extent."""
    per_elem = Cout * (2 * itemsize + 2 * 4 + 4) + 9 * Cin * itemsize
    max_thw = max(128, (vmem_limit // 4) // max(per_elem, 1))
    lane_dense = [th for th in range(1, H + 1)
                  if H % th == 0 and (th * W) % 128 == 0]
    fitting = [th for th in lane_dense if th * W <= max_thw]
    if fitting:
        return max(fitting)
    if lane_dense:
        return min(lane_dense)
    # TODO(synk): if even a single row busts the budget (huge W*Cout), the
    # width axis would need tiling as well; a full-extent block is used here.
    return H


# --------------------------------------------------------------------------
# Wrapper
# --------------------------------------------------------------------------
def cond_conv_layer(x_nchw, cond, conv_w, gain_w, bias_w, *,
                    tile_h=None, compute_dtype=jnp.bfloat16):
    """x_nchw: (N, Cin, H, W); cond: (N, cond_sz);
    conv_w: (Cout, Cin, 3, 3) [OIHW]; gain_w / bias_w: (Cout, cond_sz)."""
    N, Cin, H, W = x_nchw.shape
    Cout, _, KH, KW = conv_w.shape
    assert (KH, KW) == (3, 3), "module defaults: ks=3, stride=1, padding=1"
    f32 = jnp.float32
    cd = jnp.dtype(compute_dtype)

    vmem_limit = _vmem_limit_bytes()
    if tile_h is None:
        tile_h = _pick_tile_h(H, W, Cout, Cin, cd.itemsize, vmem_limit)
    assert H % tile_h == 0
    HT = H // tile_h
    THW = tile_h * W
    assert (THW % 128 == 0) or (HT == 1), "tile must be lane-dense or full extent"
    Hp, Wp = H + 2, W + 2

    # Layout glue in the compute dtype up front: bf16 halves HBM DMA and VMEM
    # for the pass-1 inputs; no per-step casts inside the kernel.
    xp = jnp.pad(jnp.transpose(x_nchw, (0, 2, 3, 1)),
                 ((0, 0), (1, 1), (1, 1), (0, 0))).astype(compute_dtype)   # (N,Hp,Wp,Cin)
    wmat = jnp.transpose(conv_w, (0, 2, 3, 1)).reshape(Cout, 9 * Cin) \
              .astype(compute_dtype)                                        # (Cout, 9*Cin)

    conv_bytes = N * Cout * H * W * cd.itemsize
    out_bytes = N * Cout * H * W * jnp.dtype(x_nchw.dtype).itemsize

    # ---- pass 1: conv + per-tile partial statistics ----
    conv_flat, stats = pl.pallas_call(
        _conv_stats_kernel,
        out_shape=(jax.ShapeDtypeStruct((N, Cout, H * W), compute_dtype),
                   jax.ShapeDtypeStruct((N, HT, 2, Cout), f32)),
        grid=(N, HT),
        in_specs=[
            pl.BlockSpec((1, Hp, Wp, Cin), lambda n, t: (n, 0, 0, 0)),
            pl.BlockSpec((Cout, 9 * Cin), lambda n, t: (0, 0)),
        ],
        out_specs=(
            pl.BlockSpec((1, Cout, THW), lambda n, t: (n, 0, t)),
            pl.BlockSpec((1, 1, 2, Cout), lambda n, t: (n, t, 0, 0)),
        ),
        compiler_params=pltpu.CompilerParams(
            dimension_semantics=("parallel", "parallel"),
            vmem_limit_bytes=vmem_limit),
        cost_estimate=pl.CostEstimate(
            flops=2 * N * H * W * (9 * Cin + 2) * Cout,
            transcendentals=0,
            bytes_accessed=int(xp.size) * cd.itemsize + int(wmat.size) * cd.itemsize
                           + conv_bytes + N * HT * 2 * Cout * 4),
    )(xp, wmat)

    # ---- global batch stats (training-mode BN, biased variance) + fold of the
    # conditional affine into per-sample scale/shift (tiny; plain JAX) ----
    cnt = N * H * W
    total = jnp.sum(stats, axis=(0, 1))                     # (2, Cout)
    mean = total[0] / cnt
    var = jnp.maximum(total[1] / cnt - mean * mean, 0.0)    # clamp f32 cancellation
    rstd = jax.lax.rsqrt(var + BN_EPS)
    gamma = 1.0 + cond.astype(f32) @ gain_w.astype(f32).T   # (N, Cout)
    beta = cond.astype(f32) @ bias_w.astype(f32).T          # (N, Cout)
    scale = (gamma * rstd[None, :]).reshape(N, Cout, 1)
    shift = (beta - mean[None, :] * gamma * rstd[None, :]).reshape(N, Cout, 1)

    # ---- pass 2: x*scale + shift, ReLU (pure HBM streaming, fully parallel) ----
    out_flat = pl.pallas_call(
        _bn_act_kernel,
        out_shape=jax.ShapeDtypeStruct((N, Cout, H * W), x_nchw.dtype),
        grid=(N, HT),
        in_specs=[
            pl.BlockSpec((1, Cout, THW), lambda n, t: (n, 0, t)),
            pl.BlockSpec((1, Cout, 1), lambda n, t: (n, 0, 0)),
            pl.BlockSpec((1, Cout, 1), lambda n, t: (n, 0, 0)),
        ],
        out_specs=pl.BlockSpec((1, Cout, THW), lambda n, t: (n, 0, t)),
        compiler_params=pltpu.CompilerParams(
            dimension_semantics=("parallel", "parallel"),
            vmem_limit_bytes=vmem_limit),
        cost_estimate=pl.CostEstimate(
            flops=3 * N * Cout * H * W,
            transcendentals=0,
            bytes_accessed=conv_bytes + out_bytes + 2 * N * Cout * 4),
    )(conv_flat, scale, shift)

    # (N, Cout, H*W) is already NCHW-flat: reshape only, no transpose.
    return out_flat.reshape(N, Cout, H, W)


# --------------------------------------------------------------------------
# Pure-JAX reference mirroring the PyTorch forward
# --------------------------------------------------------------------------
def reference(x_nchw, cond, conv_w, gain_w, bias_w):
    conv = jax.lax.conv_general_dilated(
        x_nchw, conv_w, window_strides=(1, 1), padding=((1, 1), (1, 1)),
        dimension_numbers=("NCHW", "OIHW", "NCHW"),
        precision=jax.lax.Precision.HIGHEST)
    mean = jnp.mean(conv, axis=(0, 2, 3), keepdims=True)
    var = jnp.mean((conv - mean) ** 2, axis=(0, 2, 3), keepdims=True)
    normed = (conv - mean) / jnp.sqrt(var + BN_EPS)
    gamma = 1.0 + cond @ gain_w.T
    beta = cond @ bias_w.T
    out = gamma[:, :, None, None] * normed + beta[:, :, None, None]
    return jnp.maximum(out, 0.0)


if __name__ == "__main__":
    # small shapes consistent with the module: ni=4, nf=8, cond_sz=16, 16x16 spatial
    N, Cin, Cout, H, W, cond_sz = 2, 4, 8, 16, 16, 16

    key = jax.random.PRNGKey(0)
    kx, kc, kw, kg, kb = jax.random.split(key, 5)

    x = jax.random.normal(kx, (N, Cin, H, W), jnp.float32)
    cond = jax.random.normal(kc, (N, cond_sz), jnp.float32)

    # kaiming-like conv init; small nonzero gain/bias weights so the conditional
    # path is exercised (the module's zeros_ init would make cond a no-op).
    conv_w = jax.random.normal(kw, (Cout, Cin, 3, 3), jnp.float32) * (2.0 / (Cin * 9)) ** 0.5
    gain_w = jax.random.normal(kg, (Cout, cond_sz), jnp.float32) * 0.1
    bias_w = jax.random.normal(kb, (Cout, cond_sz), jnp.float32) * 0.1

    ref = reference(x, cond, conv_w, gain_w, bias_w)

    # exact-precision path (f32 MXU operands / f32 intermediate), 2 spatial tiles
    out_f32 = jax.block_until_ready(
        cond_conv_layer(x, cond, conv_w, gain_w, bias_w,
                        tile_h=8, compute_dtype=jnp.float32))
    assert out_f32.shape == (N, Cout, H, W), out_f32.shape
    assert jnp.allclose(out_f32, ref, atol=2e-3, rtol=2e-3), \
        float(jnp.max(jnp.abs(out_f32 - ref)))

    # default fast path (bf16 MXU operands + bf16 intermediate, f32 stats/VPU math)
    out_bf16 = jax.block_until_ready(
        cond_conv_layer(x, cond, conv_w, gain_w, bias_w))
    assert out_bf16.shape == (N, Cout, H, W), out_bf16.shape
    assert jnp.allclose(out_bf16, ref, atol=5e-2, rtol=5e-2), \
        float(jnp.max(jnp.abs(out_bf16 - ref)))

    # TODO(synk): BatchNorm2d running_mean/running_var buffer updates are
    # training-side bookkeeping and are not materialized here.
    print("KERNEL_OK")
</pallas_src>

<mosaic_0001>
module attributes {stable_mosaic.version = 11 : i64} {
  func.func @_conv_stats_kernel(%arg0: i32, %arg1: i32, %arg2: memref<1x18x18x4xf32, #tpu.memory_space<vmem>>, %arg3: memref<8x36xf32, #tpu.memory_space<vmem>>, %arg4: memref<1x8x128xf32, #tpu.memory_space<vmem>>, %arg5: memref<1x1x2x8xf32, #tpu.memory_space<vmem>>) attributes {dimension_semantics = [#tpu.dimension_semantics<parallel>, #tpu.dimension_semantics<parallel>], iteration_bounds = array<i64: 2, 2>, scalar_prefetch = 0 : i64, scratch_operands = 0 : i64, tpu.core_type = #tpu.core_type<tc>, window_params = [{transform_indices = @transform_0, window_bounds = array<i64: 1, 18, 18, 4>}, {pipeline_mode = #tpu.pipeline_mode<synchronous>, transform_indices = @transform_1, window_bounds = array<i64: 8, 36>}, {transform_indices = @transform_2, window_bounds = array<i64: 1, 8, 128>}, {transform_indices = @transform_3, window_bounds = array<i64: 1, 1, 2, 8>}]} {
    %c8_i32 = arith.constant 8 : i32
    %0 = arith.muli %arg1, %c8_i32 : i32
    %1 = tpu.assume_multiple %0, 8 : i32
    %c0_i32 = arith.constant 0 : i32
    %2 = arith.addi %1, %c0_i32 : i32
    %c0 = arith.constant 0 : index
    %3 = arith.index_cast %2 : i32 to index
    %c0_0 = arith.constant 0 : index
    %c0_1 = arith.constant 0 : index
    %4 = vector.load %arg2[%c0, %3, %c0_0, %c0_1] : memref<1x18x18x4xf32, #tpu.memory_space<vmem>>, vector<1x8x16x4xf32>
    %5 = vector.shape_cast %4 : vector<1x8x16x4xf32> to vector<8x16x4xf32>
    %6 = vector.shape_cast %5 : vector<8x16x4xf32> to vector<128x4xf32>
    %c0_i32_2 = arith.constant 0 : i32
    %7 = arith.addi %1, %c0_i32_2 : i32
    %c0_3 = arith.constant 0 : index
    %8 = arith.index_cast %7 : i32 to index
    %c1 = arith.constant 1 : index
    %c0_4 = arith.constant 0 : index
    %9 = vector.load %arg2[%c0_3, %8, %c1, %c0_4] : memref<1x18x18x4xf32, #tpu.memory_space<vmem>>, vector<1x8x16x4xf32>
    %10 = vector.shape_cast %9 : vector<1x8x16x4xf32> to vector<8x16x4xf32>
    %11 = vector.shape_cast %10 : vector<8x16x4xf32> to vector<128x4xf32>
    %c0_i32_5 = arith.constant 0 : i32
    %12 = arith.addi %1, %c0_i32_5 : i32
    %c0_6 = arith.constant 0 : index
    %13 = arith.index_cast %12 : i32 to index
    %c2 = arith.constant 2 : index
    %c0_7 = arith.constant 0 : index
    %14 = vector.load %arg2[%c0_6, %13, %c2, %c0_7] : memref<1x18x18x4xf32, #tpu.memory_space<vmem>>, vector<1x8x16x4xf32>
    %15 = vector.shape_cast %14 : vector<1x8x16x4xf32> to vector<8x16x4xf32>
    %16 = vector.shape_cast %15 : vector<8x16x4xf32> to vector<128x4xf32>
    %c1_i32 = arith.constant 1 : i32
    %17 = arith.addi %1, %c1_i32 : i32
    %c0_8 = arith.constant 0 : index
    %18 = arith.index_cast %17 : i32 to index
    %c0_9 = arith.constant 0 : index
    %c0_10 = arith.constant 0 : index
    %19 = vector.load %arg2[%c0_8, %18, %c0_9, %c0_10] : memref<1x18x18x4xf32, #tpu.memory_space<vmem>>, vector<1x8x16x4xf32>
    %20 = vector.shape_cast %19 : vector<1x8x16x4xf32> to vector<8x16x4xf32>
    %21 = vector.shape_cast %20 : vector<8x16x4xf32> to vector<128x4xf32>
    %c1_i32_11 = arith.constant 1 : i32
    %22 = arith.addi %1, %c1_i32_11 : i32
    %c0_12 = arith.constant 0 : index
    %23 = arith.index_cast %22 : i32 to index
    %c1_13 = arith.constant 1 : index
    %c0_14 = arith.constant 0 : index
    %24 = vector.load %arg2[%c0_12, %23, %c1_13, %c0_14] : memref<1x18x18x4xf32, #tpu.memory_space<vmem>>, vector<1x8x16x4xf32>
    %25 = vector.shape_cast %24 : vector<1x8x16x4xf32> to vector<8x16x4xf32>
    %26 = vector.shape_cast %25 : vector<8x16x4xf32> to vector<128x4xf32>
    %c1_i32_15 = arith.constant 1 : i32
    %27 = arith.addi %1, %c1_i32_15 : i32
    %c0_16 = arith.constant 0 : index
    %28 = arith.index_cast %27 : i32 to index
    %c2_17 = arith.constant 2 : index
    %c0_18 = arith.constant 0 : index
    %29 = vector.load %arg2[%c0_16, %28, %c2_17, %c0_18] : memref<1x18x18x4xf32, #tpu.memory_space<vmem>>, vector<1x8x16x4xf32>
    %30 = vector.shape_cast %29 : vector<1x8x16x4xf32> to vector<8x16x4xf32>
    %31 = vector.shape_cast %30 : vector<8x16x4xf32> to vector<128x4xf32>
    %c2_i32 = arith.constant 2 : i32
    %32 = arith.addi %1, %c2_i32 : i32
    %c0_19 = arith.constant 0 : index
    %33 = arith.index_cast %32 : i32 to index
    %c0_20 = arith.constant 0 : index
    %c0_21 = arith.constant 0 : index
    %34 = vector.load %arg2[%c0_19, %33, %c0_20, %c0_21] : memref<1x18x18x4xf32, #tpu.memory_space<vmem>>, vector<1x8x16x4xf32>
    %35 = vector.shape_cast %34 : vector<1x8x16x4xf32> to vector<8x16x4xf32>
    %36 = vector.shape_cast %35 : vector<8x16x4xf32> to vector<128x4xf32>
    %c2_i32_22 = arith.constant 2 : i32
    %37 = arith.addi %1, %c2_i32_22 : i32
    %c0_23 = arith.constant 0 : index
    %38 = arith.index_cast %37 : i32 to index
    %c1_24 = arith.constant 1 : index
    %c0_25 = arith.constant 0 : index
    %39 = vector.load %arg2[%c0_23, %38, %c1_24, %c0_25] : memref<1x18x18x4xf32, #tpu.memory_space<vmem>>, vector<1x8x16x4xf32>
    %40 = vector.shape_cast %39 : vector<1x8x16x4xf32> to vector<8x16x4xf32>
    %41 = vector.shape_cast %40 : vector<8x16x4xf32> to vector<128x4xf32>
    %c2_i32_26 = arith.constant 2 : i32
    %42 = arith.addi %1, %c2_i32_26 : i32
    %c0_27 = arith.constant 0 : index
    %43 = arith.index_cast %42 : i32 to index
    %c2_28 = arith.constant 2 : index
    %c0_29 = arith.constant 0 : index
    %44 = vector.load %arg2[%c0_27, %43, %c2_28, %c0_29] : memref<1x18x18x4xf32, #tpu.memory_space<vmem>>, vector<1x8x16x4xf32>
    %45 = vector.shape_cast %44 : vector<1x8x16x4xf32> to vector<8x16x4xf32>
    %46 = vector.shape_cast %45 : vector<8x16x4xf32> to vector<128x4xf32>
    %47 = tpu.concatenate %6, %11, %16, %21, %26, %31, %36, %41, %46 in 1 : vector<128x4xf32>, vector<128x4xf32>, vector<128x4xf32>, vector<128x4xf32>, vector<128x4xf32>, vector<128x4xf32>, vector<128x4xf32>, vector<128x4xf32>, vector<128x4xf32> -> vector<128x36xf32>
    %c0_30 = arith.constant 0 : index
    %c0_31 = arith.constant 0 : index
    %48 = vector.load %arg3[%c0_30, %c0_31] : memref<8x36xf32, #tpu.memory_space<vmem>>, vector<8x36xf32>
    %cst = arith.constant dense<0.000000e+00> : vector<8x128xf32>
    %49 = tpu.matmul %48, %47, %cst {dimension_numbers = #tpu.dot_dimension_numbers<[1], [1], [0], [0], [0, 0, 1, 0], [], []>} : vector<8x36xf32>, vector<128x36xf32>, vector<8x128xf32> -> vector<8x128xf32>
    %c0_32 = arith.constant 0 : index
    %c0_33 = arith.constant 0 : index
    %c0_34 = arith.constant 0 : index
    %50 = vector.load %arg4[%c0_32, %c0_33, %c0_34] : memref<1x8x128xf32, #tpu.memory_space<vmem>>, vector<1x8x128xf32>
    %51 = vector.shape_cast %50 : vector<1x8x128xf32> to vector<8x128xf32>
    %52 = vector.shape_cast %49 : vector<8x128xf32> to vector<1x8x128xf32>
    tpu.vector_store %arg4[%c0_32, %c0_33, %c0_34], %52 {strides = array<i32>} : memref<1x8x128xf32, #tpu.memory_space<vmem>>, vector<1x8x128xf32>,
    %cst_35 = arith.constant 1.000000e+00 : f32
    %53 = vector.broadcast %cst_35 : f32 to vector<1x128xf32>
    %cst_36 = arith.constant dense<0.000000e+00> : vector<1x8xf32>
    %54 = tpu.matmul %53, %49, %cst_36 {dimension_numbers = #tpu.dot_dimension_numbers<[1], [1], [0], [0], [0, 0, 1, 0], [], []>} : vector<1x128xf32>, vector<8x128xf32>, vector<1x8xf32> -> vector<1x8xf32>
    %55 = arith.mulf %49, %49 : vector<8x128xf32>
    %cst_37 = arith.constant dense<0.000000e+00> : vector<1x8xf32>
    %56 = tpu.matmul %53, %55, %cst_37 {dimension_numbers = #tpu.dot_dimension_numbers<[1], [1], [0], [0], [0, 0, 1, 0], [], []>} : vector<1x128xf32>, vector<8x128xf32>, vector<1x8xf32> -> vector<1x8xf32>
    %57 = tpu.concatenate %54, %56 in 0 : vector<1x8xf32>, vector<1x8xf32> -> vector<2x8xf32>
    %c0_38 = arith.constant 0 : index
    %c0_39 = arith.constant 0 : index
    %c0_40 = arith.constant 0 : index
    %c0_41 = arith.constant 0 : index
    %58 = vector.load %arg5[%c0_38, %c0_39, %c0_40, %c0_41] : memref<1x1x2x8xf32, #tpu.memory_space<vmem>>, vector<1x1x2x8xf32>
    %59 = vector.shape_cast %58 : vector<1x1x2x8xf32> to vector<2x8xf32>
    %60 = vector.shape_cast %57 : vector<2x8xf32> to vector<1x1x2x8xf32>
    tpu.vector_store %arg5[%c0_38, %c0_39, %c0_40, %c0_41], %60 {strides = array<i32>} : memref<1x1x2x8xf32, #tpu.memory_space<vmem>>, vector<1x1x2x8xf32>,
    return
  }
  func.func @transform_0(%arg0: i32, %arg1: i32) -> (i32, i32, i32, i32) {
    %c0_i32 = arith.constant 0 : i32
    %c0_i32_0 = arith.constant 0 : i32
    %c0_i32_1 = arith.constant 0 : i32
    %c0_i32_2 = arith.constant 0 : i32
    return %arg0, %c0_i32, %c0_i32_0, %c0_i32_1 : i32, i32, i32, i32
  }
  func.func @transform_1(%arg0: i32, %arg1: i32) -> (i32, i32) {
    %c0_i32 = arith.constant 0 : i32
    %c0_i32_0 = arith.constant 0 : i32
    %c0_i32_1 = arith.constant 0 : i32
    return %c0_i32, %c0_i32_0 : i32, i32
  }
  func.func @transform_2(%arg0: i32, %arg1: i32) -> (i32, i32, i32) {
    %c0_i32 = arith.constant 0 : i32
    %c0_i32_0 = arith.constant 0 : i32
    return %arg0, %c0_i32, %arg1 : i32, i32, i32
  }
  func.func @transform_3(%arg0: i32, %arg1: i32) -> (i32, i32, i32, i32) {
    %c0_i32 = arith.constant 0 : i32
    %c0_i32_0 = arith.constant 0 : i32
    %c0_i32_1 = arith.constant 0 : i32
    return %arg0, %arg1, %c0_i32, %c0_i32_0 : i32, i32, i32, i32
  }
}

</mosaic_0001>

<bundles_post_ra>
// kernel: tpu_custom_call.1
= control target key start
LH: loop header
LB: loop body
LE: loop exit
PB: predicated region body
PF: predicated region fallthrough
CT: control target
= control target key end

     0   :  { %s2371_s0 = inlined_call_operand.vmem [shape: f32[2,18,18,4], index: 0, kind: input, shape index: {}]   ;;  %s2372_s1 = inlined_call_operand.vmem [shape: f32[8,36], index: 1, kind: input, shape index: {}]   ;;  %s2373_s2 = inlined_call_operand.hbm [shape: f32[2,8,256], index: 2, kind: output, shape index: {0}]   ;;  %s2374_s3 = inlined_call_operand.hbm [shape: f32[2,2,2,8], index: 3, kind: output, shape index: {1}]  }
   0x1   :  { %2375 = sst [smem:[#allocation8_spill]] %s2371_s0 }
   0x2   :  { %9 = vsyncpa [#allocation3], 0 }
   0x3   :  { %11 = vsyncpa [#allocation3 + $0x1], 0 }
   0x4   :  { %12 = vsyncpa [#allocation5], 0 }
   0x5   :  { %14 = vsyncpa [#allocation5 + $0x1], 0  ;;  %s1653_s12 = smov 0   ;;  %s1655_s13 = smov 0  }
   0x6   :  { %s1657_s14 = smov 0   ;;  %s1659_s15 = smov 0  }
   0x7   :  { %s1661_s16 = smov 0   ;;  %s1663_s17 = smov 0  }
   0x8   :  { %s1665_s18 = smov 0   ;;  %s1667_s19 = smov 0  }
   0x9 LB: > { %s1275_s20 = sadd.s32 4294967295, %s1622_s19   ;;  %s1276_s21 = sadd.s32 4294967294, %s1622_s19   ;;  %s1622_s19 = sphi %s1667_s19, %s20_s19   ;;  %s1618_s18 = sphi %s1665_s18, %s2385_s18   ;;  %s1614_s17 = sphi %s1663_s17, %s2384_s17   ;;  %s1610_s16 = sphi %s1661_s16, %s2383_s16   ;;  %s1606_s15 = sphi %s1659_s15, %s2382_s15   ;;  %s1602_s14 = sphi %s1657_s14, %s2381_s14   ;;  %s1598_s13 = sphi %s1655_s13, %s2380_s13   ;;  %s1594_s12 = sphi %s1653_s12, %s2379_s12  }
   0xa   : > { %s29_s22 = sadd.s32 1, %s1614_s17  ;;  %s32_s23 = sadd.s32 1, %s1618_s18 }
   0xb   : > { %p30_p0 = scmp.ge.s32.totalorder %s29_s22, 2  ;;  %p98_p1 = scmp.ne.s32.totalorder %s1602_s14, %s1598_s13 }
   0xc   : > { %p99_p2 = scmp.eq.s32.totalorder %s1275_s20, 3  ;;  %p104_p5 = scmp.ne.s32.totalorder %s1598_s13, %s1594_s12 }
   0xd   : > { %s2387_s22 = smov (%p30_p0, %s29_s22), 0  ;;  %s2389_s23 = smov (!%p30_p0, %s32_s23), %s1618_s18 }
   0xe   : > { %s84_s24 = ssub.s32 %s1614_s17, %s2387_s22  ;;  %p1704_p3 = por %p99_p2, %p98_p1 }
   0xf   : > { %p34_p4 = scmp.ge.s32.totalorder %s2389_s23, 2  ;;  %p105_p6 = scmp.eq.s32.totalorder %s1276_s21, 3 }
  0x10   : > { %p1279_p7 = scmp.ge.s32.totalorder %s1622_s19, 1  ;;  %p162_p9 = scmp.lt.s32.totalorder %s1622_s19, 5 }
  0x11   : > { %s2391_s23 = smov (%p34_p4, %s2389_s23), 0  ;;  %p1713_p8 = por %p105_p6, %p104_p5 }
  0x12   : > { %s83_s27 = ssub.s32 %s1618_s18, %s2391_s23  ;;  %s88_s28 = sadd.s32 1, %s1602_s14 }
  0x13   : > { %s85_s29 = sor.u32 %s84_s24, %s83_s27  ;;  %p163_p10 = pnand %p1279_p7, %p162_p9 }
  0x14   : > { %p86_p11 = scmp.eq.s32.totalorder %s85_s29, 0  ;;  %p191_p12 = scmp.lt.s32.totalorder (!%p163_p10), %s1610_s16, 1 }
  0x15   : > { %166 = sbr.rel (%p163_p10) target bundleno = 758 (0x2f6), region = 28  ;;  %s2378_s0 = sld [smem:[#allocation8_spill]] (!%p163_p10) }
  0x16   : > { %s1722_s30 = scalar_select %p86_p11, %s1602_s14, %s88_s28  }
  0x17   : > { %s1284_s5 = smul.u32 (!%p163_p10), 192, %s1606_s15  ;;  %s1624_s11 = smov (!%p163_p10), 8  }
  0x18   : > { %s1625_s20 = smov (!%p163_p10), 4   ;;  %s1626_s21 = smov (!%p163_p10), 12  }
  0x19   : > { %s1627_s24 = smov (!%p163_p10), 20   ;;  %s1628_s27 = smov (!%p163_p10), 16  }
  0x1a   : > { %s192_s4 = scalar_select %p191_p12, %s1610_s16, 1  ;;  %vm861_vm0 = vcmask 31744   ;;  %vm878_vm1 = vcmask 64512   ;;  %vm895_vm2 = vcmask 97280   ;;  %vm912_vm3 = vcmask 130048  }
  0x1b   : > { %s1629_s28 = smov 24   ;;  %s1630_s29 = smov 32   ;;  %vm929_vm4 = vcmask 162816   ;;  %vm946_vm5 = vcmask 195584   ;;  %vm963_vm6 = vcmask 228352   ;;  %vm980_vm7 = vcmask 261120  }
  0x1c   : > { %s1410_s6 = smul.u32 432, %s192_s4  ;;  %s1631_s4 = smov 28   ;;  %vm998_vm8 = vcmask 293888  }
  0x1d   : > { %s2309_s7 = sand.u32 1, %s1598_s13  }
  0x1e   : > { %s195_s9 = scalar_lea.vmem %s2378_s0, %s1410_s6  ;;  %s1280_s8 = sshll.u32 %s2309_s7, 3 }
  0x1f   : > { %s1730_s10 = scalar_lea.vmem %s195_s9, %s1284_s5  ;;  %s183_s9 = scalar_lea.vmem [#allocation2], %s1280_s8 }
  0x20   : > { %v1733_v0 = vld [vmem:[%s1730_s10 + $0xb2] sm:$0xff]  ;;  %v215_v2 = vld [vmem:[%s1730_s10 + $0x1] sm:$0xff]  ;;  %v216_v5 = vld [vmem:[%s1730_s10 + $0x9] sm:$0xff] }
  0x21   : > { %v1736_v1 = vld [vmem:[%s1730_s10 + $0x19] sm:$0xff]  ;;  %459 = vrot.lane.b32.xlu2 %v1733_v0, %s1624_s11  ;;  %365 = vrot.lane.b32.xlu0 %v215_v2, %s1625_s20  ;;  %v1302_v3 = vld [vmem:[%s1730_s10 + $0xc8] sm:$0xff] }
  0x22   : > { %369 = vrot.lane.b32.xlu1 %v1736_v1, %s1625_s20  ;;  %v1746_v4 = vld [vmem:[%s1730_s10 + $0xb1] sm:$0xff]  ;;  %v1755_v7 = vld [vmem:[%s1730_s10 + $0xa9] sm:$0xff]  ;;  %v1301_v9 = vld [vmem:[%s1730_s10 + $0xc0] sm:$0xff] }
  0x23   : > { %v1334_v6 = vld [vmem:[%s1730_s10 + $0xca] sm:$0xff]  ;;  %v1352_v10 = vld [vmem:[%s1730_s10 + $0xe0] sm:$0xff]  ;;  %v1351_v20 = vld [vmem:[%s1730_s10 + $0xd8] sm:$0xff] }
  0x24   : > { %v1318_v8 = vld [vmem:[%s1730_s10 + $0xc9] sm:$0xff]  ;;  %v1317_v13 = vld [vmem:[%s1730_s10 + $0xc1] sm:$0xff]  ;;  %v1782_v17 = vld [vmem:[%s1730_s10 + $0x99] sm:$0xff] }
  0x25   : > { %v1765_v11 = vld [vmem:[%s1730_s10 + $0xaa] sm:$0xff]  ;;  %v1384_v12 = vld [vmem:[%s1730_s10 + $0xe2] sm:$0xff]  ;;  %v1778_v15 = vld [vmem:[%s1730_s10 + $0x9a] sm:$0xff] }
  0x26   : > { %v1368_v14 = vld [vmem:[%s1730_s10 + $0xe1] sm:$0xff]  ;;  %v1367_v18 = vld [vmem:[%s1730_s10 + $0xd9] sm:$0xff]  ;;  %v1791_v19 = vld [vmem:[%s1730_s10 + $0xb0] sm:$0xff] }
  0x27   : > { %v1333_v16 = vld [vmem:[%s1730_s10 + $0xc2] sm:$0xff]  ;;  %v1799_v21 = vld [vmem:[%s1730_s10 + $0x91] sm:$0xff]  ;;  %v1383_v22 = vld [vmem:[%s1730_s10 + $0xda] sm:$0xff] }
  0x28   : > { %v1808_v23 = vld [vmem:[%s1730_s10 + $0x92] sm:$0xff]  ;;  %v1816_v24 = vld [vmem:[%s1730_s10 + $0xa8] sm:$0xff]  ;;  %v1847_v30 = vld [vmem:[%s1730_s10 + $0x7a] sm:$0xff] }
  0x29   : > { %523 = vrot.lane.b32.xlu2 %v1302_v3, %s1626_s21  ;;  %367 = vrot.lane.b32.xlu0 %v216_v5, %s1625_s20  ;;  %v1824_v25 = vld [vmem:[%s1730_s10 + $0x81] sm:$0xff]  ;;  %v1832_v26 = vld [vmem:[%s1730_s10 + $0x98] sm:$0xff] }
  0x2a   : > { %395 = vrot.lane.b32.xlu1 %v1746_v4, %s1625_s20  ;;  %v1835_v27 = vld [vmem:[%s1730_s10 + $0x82] sm:$0xff]  ;;  %v1850_v31 = vld [vmem:[%s1730_s10 + $0x79] sm:$0xff]  ;;  %v1859_v33 = vld [vmem:[%s1730_s10 + $0x90] sm:$0xff] }
  0x2b   : > { %v1874_v37 = vld [vmem:[%s1730_s10 + $0x69] sm:$0xff]  ;;  %v1896_v45 = vld [vmem:[%s1730_s10 + $0x80] sm:$0xff]  ;;  %v1925_v61 = vld [vmem:[%s1730_s10 + $0x78] sm:$0xff] }
  0x2c   : > { %v1885_v41 = vld [vmem:[%s1730_s10 + $0x6a] sm:$0xff]  ;;  %v1908_v51 = vld [vmem:[%s1730_s10 + $0x61] sm:$0xff] }
  0x2d   : > { %v1929_v62 = vld [vmem:[%s1730_s10 + $0x62] sm:$0xff] }
  0x31   : > { %651 = vrot.lane.b32.xlu2 %v1334_v6, %s1627_s24  ;;  %587 = vrot.lane.b32.xlu0 %v1318_v8, %s1628_s27 }
  0x32   : > { %393 = vrot.lane.b32.xlu1 %v1755_v7, %s1625_s20 }
  0x39   : > { %521 = vrot.lane.b32.xlu2 %v1301_v9, %s1626_s21  ;;  %457 = vrot.lane.b32.xlu0 %v1765_v11, %s1624_s11 }
  0x3a   : > { %715 = vrot.lane.b32.xlu1 %v1352_v10, %s1629_s28  ;;  %v1950_v10 = vld [vmem:[%s1730_s10 + $0x52] sm:$0xff] }
  0x41   : > { %843 = vrot.lane.b32.xlu2 %v1384_v12, %s1630_s29  ;;  %779 = vrot.lane.b32.xlu0 %v1368_v14, %s1631_s4  ;;  %v1954_v12 = vld [vmem:[%s1730_s10 + $0x51] sm:$0xff] }
  0x42   : > { %585 = vrot.lane.b32.xlu1 %v1317_v13, %s1628_s27 }
  0x49   : > { %455 = vrot.lane.b32.xlu2 %v1778_v15, %s1624_s11  ;;  %391 = vrot.lane.b32.xlu0 %v1782_v17, %s1625_s20 }
  0x4a   : > { %649 = vrot.lane.b32.xlu1 %v1333_v16, %s1627_s24 }
  0x51   : > { %777 = vrot.lane.b32.xlu2 %v1367_v18, %s1631_s4  ;;  %713 = vrot.lane.b32.xlu0 %v1351_v20, %s1629_s28 }
  0x52   : > { %519 = vrot.lane.b32.xlu1 %v1791_v19, %s1626_s21 }
  0x59   : > { %389 = vrot.lane.b32.xlu2 %v1799_v21, %s1625_s20  ;;  %583 = vrot.lane.b32.xlu0 %v1746_v4, %s1628_s27 }
  0x5a   : > { %841 = vrot.lane.b32.xlu1 %v1383_v22, %s1630_s29 }
  0x61   : > { %711 = vrot.lane.b32.xlu2 %v1302_v3, %s1629_s28  ;;  %647 = vrot.lane.b32.xlu0 %v1733_v0, %s1627_s24 }
  0x62   : > { %453 = vrot.lane.b32.xlu1 %v1808_v23, %s1624_s11 }
  0x69   : > { %581 = vrot.lane.b32.xlu2 %v1755_v7, %s1628_s27  ;;  %517 = vrot.lane.b32.xlu0 %v1816_v24, %s1626_s21 }
  0x6a   : > { %775 = vrot.lane.b32.xlu1 %v1318_v8, %s1631_s4 }
  0x71   : > { %645 = vrot.lane.b32.xlu2 %v1765_v11, %s1627_s24  ;;  %839 = vrot.lane.b32.xlu0 %v1334_v6, %s1630_s29 }
  0x72   : > { %387 = vrot.lane.b32.xlu1 %v1824_v25, %s1625_s20 }
  0x79   : > { %515 = vrot.lane.b32.xlu2 %v1832_v26, %s1626_s21  ;;  %451 = vrot.lane.b32.xlu0 %v1835_v27, %s1624_s11 }
  0x7a   : > { %709 = vrot.lane.b32.xlu1 %v1301_v9, %s1629_s28 }
  0x7b   : > { %v460_v28 = vpop.permute.xlu2 %459 }
  0x81   : > { %837 = vrot.lane.b32.xlu2 %v1333_v16, %s1630_s29  ;;  %773 = vrot.lane.b32.xlu0 %v1317_v13, %s1631_s4 }
  0x82   : > { %579 = vrot.lane.b32.xlu1 %v1782_v17, %s1628_s27 }
  0x83   : > { %v524_v29 = vpop.permute.xlu2 %523 }
  0x89   : > { %449 = vrot.lane.b32.xlu2 %v1847_v30, %s1624_s11  ;;  %385 = vrot.lane.b32.xlu0 %v1850_v31, %s1625_s20 }
  0x8a   : > { %643 = vrot.lane.b32.xlu1 %v1778_v15, %s1627_s24 }
  0x8b   : > { %v652_v32 = vpop.permute.xlu2 %651 }
  0x91   : > { %771 = vrot.lane.b32.xlu2 %v1746_v4, %s1631_s4  ;;  %707 = vrot.lane.b32.xlu0 %v1791_v19, %s1629_s28 }
  0x92   : > { %513 = vrot.lane.b32.xlu1 %v1859_v33, %s1626_s21 }
  0x93   : > { %v1867_v34 = vpop.permute.xlu2 %521  ;;  %v1871_v36 = vpop.permute.xlu0 %365 }
  0x94   : > { %v1869_v35 = vpop.permute.xlu1 %369 }
  0x99   : > { %383 = vrot.lane.b32.xlu2 %v1874_v37, %s1625_s20  ;;  %577 = vrot.lane.b32.xlu0 %v1799_v21, %s1628_s27 }
  0x9a   : > { %835 = vrot.lane.b32.xlu1 %v1733_v0, %s1630_s29 }
  0x9b   : > { %v844_v38 = vpop.permute.xlu2 %843  ;;  %v1882_v40 = vpop.permute.xlu0 %367 }
  0x9c   : > { %v396_v39 = vpop.permute.xlu1 %395 }
  0x9d   : > { %v877_v46 = vsel %vm861_vm0, %v1791_v19, %v396_v39  ;;  %v1967_v19 = vld [vmem:[%s1730_s10 + $0x68] sm:$0xff] }
  0x9e   : > { %v894_v49 = vsel %vm878_vm1, %v877_v46, %v460_v28  ;;  %v1978_v28 = vld [vmem:[%s1730_s10 + $0x49] sm:$0xff] }
  0x9f   : > { %v911_v52 = vsel %vm895_vm2, %v894_v49, %v524_v29 }
  0xa1   : > { %705 = vrot.lane.b32.xlu2 %v1816_v24, %s1629_s28  ;;  %641 = vrot.lane.b32.xlu0 %v1808_v23, %s1627_s24 }
  0xa2   : > { %447 = vrot.lane.b32.xlu1 %v1885_v41, %s1624_s11 }
  0xa3   : > { %v1893_v42 = vpop.permute.xlu2 %455  ;;  %v588_v44 = vpop.permute.xlu0 %587 }
  0xa4   : > { %v394_v43 = vpop.permute.xlu1 %393  ;;  %v928_v53 = vsel %vm912_vm3, %v911_v52, %v588_v44 }
  0xa5   : > { %v945_v54 = vsel %vm929_vm4, %v928_v53, %v652_v32  ;;  %v876_v3 = vsel %vm861_vm0, %v1816_v24, %v394_v43  ;;  %v1992_v43 = vld [vmem:[%s1730_s10 + $0x4a] sm:$0xff] }
  0xa9   : > { %575 = vrot.lane.b32.xlu2 %v1824_v25, %s1628_s27  ;;  %511 = vrot.lane.b32.xlu0 %v1896_v45, %s1626_s21 }
  0xaa   : > { %769 = vrot.lane.b32.xlu1 %v1755_v7, %s1631_s4 }
  0xab   : > { %v778_v47 = vpop.permute.xlu2 %777  ;;  %v458_v50 = vpop.permute.xlu0 %457 }
  0xac   : > { %v716_v48 = vpop.permute.xlu1 %715  ;;  %v893_v4 = vsel %vm878_vm1, %v876_v3, %v458_v50  ;;  %v2009_v50 = vld [vmem:[%s1730_s10 + $0x60] sm:$0xff] }
  0xad   : > { %v962_v57 = vsel %vm946_vm5, %v945_v54, %v716_v48  ;;  %v910_v8 = vsel %vm895_vm2, %v893_v4, %v1867_v34  ;;  %v2039_v4 = vld [vmem:[%s1730_s10 + $0x50] sm:$0xff] }
  0xb1   : > { %639 = vrot.lane.b32.xlu2 %v1835_v27, %s1627_s24  ;;  %833 = vrot.lane.b32.xlu0 %v1765_v11, %s1630_s29 }
  0xb2   : > { %381 = vrot.lane.b32.xlu1 %v1908_v51, %s1625_s20 }
  0xb3   : > { %v1919_v55 = vpop.permute.xlu2 %389  ;;  %v780_v58 = vpop.permute.xlu0 %779 }
  0xb4   : > { %v586_v56 = vpop.permute.xlu1 %585  ;;  %v979_v59 = vsel %vm963_vm6, %v962_v57, %v780_v58  ;;  %v874_v52 = vsel %vm861_vm0, %v1859_v33, %v1919_v55 }
  0xb5   : > { %v996_v60 = vsel %vm980_vm7, %v979_v59, %v844_v38  ;;  %v927_v9 = vsel %vm912_vm3, %v910_v8, %v586_v56  ;;  %v2023_v59 = vld [vmem:[%s1730_s10 + $0x39] sm:$0xff] }
  0xb6   : > { %1385 = vmatpush.xpose.msk.msra.mxu0 %vm998_vm8, %v996_v60 }
  0xb9   : > { %509 = vrot.lane.b32.xlu2 %v1925_v61, %s1626_s21  ;;  %445 = vrot.lane.b32.xlu0 %v1929_v62, %s1624_s11 }
  0xba   : > { %703 = vrot.lane.b32.xlu1 %v1832_v26, %s1629_s28 }
  0xbb   : > { %v712_v63 = vpop.permute.xlu2 %711  ;;  %v392_v2 = vpop.permute.xlu0 %391 }
  0xbc   : > { %v650_v0 = vpop.permute.xlu1 %649 }
  0xbd   : > { %v944_v11 = vsel %vm929_vm4, %v927_v9, %v650_v0 }
  0xc1   : > { %831 = vrot.lane.b32.xlu2 %v1778_v15, %s1630_s29  ;;  %767 = vrot.lane.b32.xlu0 %v1782_v17, %s1631_s4 }
  0xc2   : > { %573 = vrot.lane.b32.xlu1 %v1850_v31, %s1628_s27 }
  0xc3   : > { %v582_v5 = vpop.permute.xlu2 %581  ;;  %v714_v7 = vpop.permute.xlu0 %713 }
  0xc4   : > { %v520_v6 = vpop.permute.xlu1 %519  ;;  %v961_v13 = vsel %vm946_vm5, %v944_v11, %v714_v7 }
  0xc5   : > { %v978_v16 = vsel %vm963_vm6, %v961_v13, %v778_v47 }
  0xc9   : > { %443 = vrot.lane.b32.xlu2 %v1950_v10, %s1624_s11  ;;  %379 = vrot.lane.b32.xlu0 %v1954_v12, %s1625_s20 }
  0xca   : > { %637 = vrot.lane.b32.xlu1 %v1847_v30, %s1627_s24 }
  0xcb   : > { %v646_v14 = vpop.permute.xlu2 %645  ;;  %v584_v17 = vpop.permute.xlu0 %583 }
  0xcc   : > { %v842_v15 = vpop.permute.xlu1 %841 }
  0xcd   : > { %v995_v18 = vsel %vm980_vm7, %v978_v16, %v842_v15  ;;  %v2064_v16 = vld [vmem:[%s1730_s10 + $0x32] sm:$0xff] }
  0xce   : > { %1386 = vmatpush.xpose.msk.msra.mxu0 %vm998_vm8, %v995_v18 }
  0xd1   : > { %765 = vrot.lane.b32.xlu2 %v1799_v21, %s1631_s4  ;;  %701 = vrot.lane.b32.xlu0 %v1859_v33, %s1629_s28  ;;  %v875_v21 = vsel %vm861_vm0, %v1832_v26, %v392_v2 }
  0xd2   : > { %507 = vrot.lane.b32.xlu1 %v1967_v19, %s1626_s21  ;;  %v892_v38 = vsel %vm878_vm1, %v875_v21, %v1893_v42 }
  0xd3   : > { %v1975_v20 = vpop.permute.xlu2 %515  ;;  %v648_v24 = vpop.permute.xlu0 %647  ;;  %v909_v39 = vsel %vm895_vm2, %v892_v38, %v520_v6 }
  0xd4   : > { %v454_v22 = vpop.permute.xlu1 %453  ;;  %v926_v44 = vsel %vm912_vm3, %v909_v39, %v584_v17  ;;  %v2068_v17 = vld [vmem:[%s1730_s10 + $0x31] sm:$0xff]  ;;  %v2092_v39 = vld [vmem:[%s1730_s10 + $0x21] sm:$0xff] }
  0xd5   : > { %v891_v56 = vsel %vm878_vm1, %v874_v52, %v454_v22 }
  0xd9   : > { %377 = vrot.lane.b32.xlu2 %v1978_v28, %s1625_s20  ;;  %571 = vrot.lane.b32.xlu0 %v1874_v37, %s1628_s27 }
  0xda   : > { %829 = vrot.lane.b32.xlu1 %v1808_v23, %s1630_s29  ;;  %v943_v23 = vsel %vm929_vm4, %v926_v44, %v648_v24 }
  0xdb   : > { %v838_v29 = vpop.permute.xlu2 %837  ;;  %v518_v34 = vpop.permute.xlu0 %517  ;;  %v960_v26 = vsel %vm946_vm5, %v943_v23, %v712_v63 }
  0xdc   : > { %v776_v32 = vpop.permute.xlu1 %775  ;;  %v908_v58 = vsel %vm895_vm2, %v891_v56, %v518_v34 }
  0xdd   : > { %v977_v47 = vsel %vm963_vm6, %v960_v26, %v776_v32  ;;  %v925_v33 = vsel %vm912_vm3, %v908_v58, %v582_v5  ;;  %v2043_v5 = vld [vmem:[%s1730_s10 + $0x3a] sm:$0xff] }
  0xe1   : > { %699 = vrot.lane.b32.xlu2 %v1896_v45, %s1629_s28  ;;  %635 = vrot.lane.b32.xlu0 %v1885_v41, %s1627_s24 }
  0xe2   : > { %441 = vrot.lane.b32.xlu1 %v1992_v43, %s1624_s11 }
  0xe3   : > { %v2003_v42 = vpop.permute.xlu2 %449  ;;  %v840_v48 = vpop.permute.xlu0 %839 }
  0xe4   : > { %v388_v46 = vpop.permute.xlu1 %387  ;;  %v994_v49 = vsel %vm980_vm7, %v977_v47, %v840_v48  ;;  %v2106_v48 = vld [vmem:[%s1730_s10 + $0x22] sm:$0xff] }
  0xe5   : > { %1387 = vmatpush.xpose.msk.msra.mxu0 %vm998_vm8, %v994_v49  ;;  %v873_v8 = vsel %vm861_vm0, %v1896_v45, %v388_v46 }
  0xe9   : > { %569 = vrot.lane.b32.xlu2 %v1908_v51, %s1628_s27  ;;  %505 = vrot.lane.b32.xlu0 %v2009_v50, %s1626_s21 }
  0xea   : > { %763 = vrot.lane.b32.xlu1 %v1824_v25, %s1631_s4  ;;  %v942_v25 = vsel %vm929_vm4, %v925_v33, %v646_v14 }
  0xeb   : > { %v772_v53 = vpop.permute.xlu2 %771  ;;  %v452_v57 = vpop.permute.xlu0 %451 }
  0xec   : > { %v710_v54 = vpop.permute.xlu1 %709  ;;  %v890_v9 = vsel %vm878_vm1, %v873_v8, %v452_v57  ;;  %v2123_v57 = vld [vmem:[%s1730_s10 + $0x38] sm:$0xff] }
  0xed   : > { %v959_v63 = vsel %vm946_vm5, %v942_v25, %v710_v54  ;;  %v907_v15 = vsel %vm895_vm2, %v890_v9, %v1975_v20  ;;  %v2153_v9 = vld [vmem:[%s1730_s10 + $0x30] sm:$0xff] }
  0xf1   : > { %633 = vrot.lane.b32.xlu2 %v1929_v62, %s1627_s24  ;;  %827 = vrot.lane.b32.xlu0 %v1835_v27, %s1630_s29 }
  0xf2   : > { %375 = vrot.lane.b32.xlu1 %v2023_v59, %s1625_s20 }
  0xf3   : > { %v2033_v55 = vpop.permute.xlu2 %383  ;;  %v774_v0 = vpop.permute.xlu0 %773 }
  0xf4   : > { %v580_v60 = vpop.permute.xlu1 %579  ;;  %v976_v2 = vsel %vm963_vm6, %v959_v63, %v774_v0  ;;  %v871_v58 = vsel %vm861_vm0, %v1967_v19, %v2033_v55 }
  0xf5   : > { %v993_v3 = vsel %vm980_vm7, %v976_v2, %v838_v29  ;;  %v924_v45 = vsel %vm912_vm3, %v907_v15, %v580_v60  ;;  %v2081_v29 = vld [vmem:[%s1730_s10 + $0x48] sm:$0xff]  ;;  %v2137_v2 = vld [vmem:[%s1730_s10 + $0x1a] sm:$0xff] }
  0xf6   : > { %1388 = vmatpush.xpose.msk.msra.mxu0 %vm998_vm8, %v993_v3 }
  0xf9   : > { %503 = vrot.lane.b32.xlu2 %v2039_v4, %s1626_s21  ;;  %439 = vrot.lane.b32.xlu0 %v2043_v5, %s1624_s11 }
  0xfa   : > { %697 = vrot.lane.b32.xlu1 %v1925_v61, %s1629_s28 }
  0xfb   : > { %v706_v27 = vpop.permute.xlu2 %705  ;;  %v386_v7 = vpop.permute.xlu0 %385 }
  0xfc   : > { %v644_v6 = vpop.permute.xlu1 %643 }
 0x101   : > { %825 = vrot.lane.b32.xlu2 %v1847_v30, %s1630_s29  ;;  %761 = vrot.lane.b32.xlu0 %v1850_v31, %s1631_s4  ;;  %v941_v30 = vsel %vm929_vm4, %v924_v45, %v644_v6 }
 0x102   : > { %567 = vrot.lane.b32.xlu1 %v1954_v12, %s1628_s27 }
 0x103   : > { %v576_v11 = vpop.permute.xlu2 %575  ;;  %v708_v14 = vpop.permute.xlu0 %707 }
 0x104   : > { %v514_v13 = vpop.permute.xlu1 %513  ;;  %v958_v18 = vsel %vm946_vm5, %v941_v30, %v708_v14 }
 0x105   : > { %v975_v22 = vsel %vm963_vm6, %v958_v18, %v772_v53 }
 0x109   : > { %437 = vrot.lane.b32.xlu2 %v2064_v16, %s1624_s11  ;;  %373 = vrot.lane.b32.xlu0 %v2068_v17, %s1625_s20 }
 0x10a   : > { %631 = vrot.lane.b32.xlu1 %v1950_v10, %s1627_s24 }
 0x10b   : > { %v640_v31 = vpop.permute.xlu2 %639  ;;  %v578_v24 = vpop.permute.xlu0 %577 }
 0x10c   : > { %v836_v20 = vpop.permute.xlu1 %835 }
 0x10d   : > { %v992_v21 = vsel %vm980_vm7, %v975_v22, %v836_v20  ;;  %v232_v20 = vld [vmem:[%s1730_s10 + $0xa] sm:$0xff] }
 0x10e   : > { %1389 = vmatpush.xpose.msk.msra.mxu0 %vm998_vm8, %v992_v21 }
 0x111   : > { %759 = vrot.lane.b32.xlu2 %v1874_v37, %s1631_s4  ;;  %695 = vrot.lane.b32.xlu0 %v1967_v19, %s1629_s28  ;;  %v872_v37 = vsel %vm861_vm0, %v1925_v61, %v386_v7 }
 0x112   : > { %501 = vrot.lane.b32.xlu1 %v2081_v29, %s1626_s21  ;;  %v889_v46 = vsel %vm878_vm1, %v872_v37, %v2003_v42 }
 0x113   : > { %v2089_v32 = vpop.permute.xlu2 %509  ;;  %v642_v38 = vpop.permute.xlu0 %641  ;;  %v906_v47 = vsel %vm895_vm2, %v889_v46, %v514_v13 }
 0x114   : > { %v448_v34 = vpop.permute.xlu1 %447  ;;  %v923_v49 = vsel %vm912_vm3, %v906_v47, %v578_v24 }
 0x115   : > { %v888_v60 = vsel %vm878_vm1, %v871_v58, %v448_v34 }
 0x119   : > { %371 = vrot.lane.b32.xlu2 %v2092_v39, %s1625_s20  ;;  %565 = vrot.lane.b32.xlu0 %v1978_v28, %s1628_s27 }
 0x11a   : > { %823 = vrot.lane.b32.xlu1 %v1885_v41, %s1630_s29  ;;  %v940_v41 = vsel %vm929_vm4, %v923_v49, %v642_v38 }
 0x11b   : > { %v832_v44 = vpop.permute.xlu2 %831  ;;  %v512_v26 = vpop.permute.xlu0 %511  ;;  %v957_v61 = vsel %vm946_vm5, %v940_v41, %v706_v27 }
 0x11c   : > { %v770_v23 = vpop.permute.xlu1 %769  ;;  %v905_v0 = vsel %vm895_vm2, %v888_v60, %v512_v26 }
 0x11d   : > { %v974_v53 = vsel %vm963_vm6, %v957_v61, %v770_v23  ;;  %v922_v19 = vsel %vm912_vm3, %v905_v0, %v576_v11  ;;  %v231_v23 = vld [vmem:[%s1730_s10 + $0x2] sm:$0xff]  ;;  %v2208_v61 = vld [vmem:[%s1730_s10 + $0x18] sm:$0xff] }
 0x121   : > { %693 = vrot.lane.b32.xlu2 %v2009_v50, %s1629_s28  ;;  %629 = vrot.lane.b32.xlu0 %v1992_v43, %s1627_s24 }
 0x122   : > { %435 = vrot.lane.b32.xlu1 %v2106_v48, %s1624_s11 }
 0x123   : > { %v2117_v42 = vpop.permute.xlu2 %443  ;;  %v834_v54 = vpop.permute.xlu0 %833 }
 0x124   : > { %v382_v52 = vpop.permute.xlu1 %381  ;;  %v991_v56 = vsel %vm980_vm7, %v974_v53, %v834_v54 }
 0x125   : > { %1390 = vmatpush.xpose.msk.msra.mxu0 %vm998_vm8, %v991_v56  ;;  %v870_v14 = vsel %vm861_vm0, %v2009_v50, %v382_v52  ;;  %v2175_v50 = vld [vmem:[%s1730_s10 + $0x20] sm:$0xff] }
 0x129   : > { %563 = vrot.lane.b32.xlu2 %v2023_v59, %s1628_s27  ;;  %499 = vrot.lane.b32.xlu0 %v2123_v57, %s1626_s21 }
 0x12a   : > { %757 = vrot.lane.b32.xlu1 %v1908_v51, %s1631_s4  ;;  %v939_v51 = vsel %vm929_vm4, %v922_v19, %v640_v31 }
 0x12b   : > { %v766_v33 = vpop.permute.xlu2 %765  ;;  %v446_v63 = vpop.permute.xlu0 %445 }
 0x12c   : > { %v704_v25 = vpop.permute.xlu1 %703  ;;  %v887_v15 = vsel %vm878_vm1, %v870_v14, %v446_v63 }
 0x12d   : > { %v956_v27 = vsel %vm946_vm5, %v939_v51, %v704_v25  ;;  %v904_v18 = vsel %vm895_vm2, %v887_v15, %v2089_v32 }
 0x131   : > { %433 = vrot.lane.b32.xlu2 %v2137_v2, %s1624_s11  ;;  %821 = vrot.lane.b32.xlu0 %v1929_v62, %s1630_s29 }
 0x132   : > { %627 = vrot.lane.b32.xlu1 %v2043_v5, %s1627_s24 }
 0x133   : > { %v2147_v55 = vpop.permute.xlu2 %377  ;;  %v768_v6 = vpop.permute.xlu0 %767 }
 0x134   : > { %v574_v3 = vpop.permute.xlu1 %573  ;;  %v973_v7 = vsel %vm963_vm6, %v956_v27, %v768_v6 }
 0x135   : > { %v990_v8 = vsel %vm980_vm7, %v973_v7, %v832_v44  ;;  %v921_v31 = vsel %vm912_vm3, %v904_v18, %v574_v3 }
 0x136   : > { %1391 = vmatpush.xpose.msk.msra.mxu0 %vm998_vm8, %v990_v8 }
 0x139   : > { %755 = vrot.lane.b32.xlu2 %v1954_v12, %s1631_s4  ;;  %691 = vrot.lane.b32.xlu0 %v2039_v4, %s1629_s28 }
 0x13a   : > { %497 = vrot.lane.b32.xlu1 %v2153_v9, %s1626_s21 }
 0x13b   : > { %v700_v62 = vpop.permute.xlu2 %699  ;;  %v380_v13 = vpop.permute.xlu0 %379 }
 0x13c   : > { %v638_v11 = vpop.permute.xlu1 %637  ;;  %v869_v46 = vsel %vm861_vm0, %v2039_v4, %v380_v13 }
 0x141   : > { %625 = vrot.lane.b32.xlu2 %v2064_v16, %s1627_s24  ;;  %561 = vrot.lane.b32.xlu0 %v2068_v17, %s1628_s27 }
 0x142   : > { %819 = vrot.lane.b32.xlu1 %v1950_v10, %s1630_s29  ;;  %v938_v10 = vsel %vm929_vm4, %v921_v31, %v638_v11 }
 0x143   : > { %v570_v12 = vpop.permute.xlu2 %569  ;;  %v702_v30 = vpop.permute.xlu0 %701 }
 0x144   : > { %v508_v45 = vpop.permute.xlu1 %507  ;;  %v955_v22 = vsel %vm946_vm5, %v938_v10, %v702_v30 }
 0x145   : > { %v972_v21 = vsel %vm963_vm6, %v955_v22, %v766_v33 }
 0x149   : > { %495 = vrot.lane.b32.xlu2 %v2175_v50, %s1626_s21  ;;  %431 = vrot.lane.b32.xlu0 %v232_v20, %s1624_s11 }
 0x14a   : > { %689 = vrot.lane.b32.xlu1 %v2081_v29, %s1629_s28 }
 0x14b   : > { %v572_v32 = vpop.permute.xlu0 %571  ;;  %v634_v38 = vpop.permute.xlu2 %633 }
 0x14c   : > { %v830_v24 = vpop.permute.xlu1 %829 }
 0x14d   : > { %v989_v34 = vsel %vm980_vm7, %v972_v21, %v830_v24 }
 0x14e   : > { %1392 = vmatpush.xpose.msk.msra.mxu0 %vm998_vm8, %v989_v34 }
 0x151   : > { %817 = vrot.lane.b32.xlu2 %v1992_v43, %s1630_s29  ;;  %753 = vrot.lane.b32.xlu0 %v1978_v28, %s1631_s4  ;;  %v886_v28 = vsel %vm878_vm1, %v869_v46, %v2117_v42 }
 0x152   : > { %559 = vrot.lane.b32.xlu1 %v2092_v39, %s1628_s27  ;;  %v903_v47 = vsel %vm895_vm2, %v886_v28, %v508_v45 }
 0x153   : > { %v636_v44 = vpop.permute.xlu0 %635  ;;  %v504_v26 = vpop.permute.xlu2 %503  ;;  %v920_v49 = vsel %vm912_vm3, %v903_v47, %v572_v32 }
 0x154   : > { %v442_v37 = vpop.permute.xlu1 %441  ;;  %v937_v41 = vsel %vm929_vm4, %v920_v49, %v636_v44 }
 0x155   : > { %v954_v4 = vsel %vm946_vm5, %v937_v41, %v700_v62 }
 0x159   : > { %687 = vrot.lane.b32.xlu2 %v2123_v57, %s1629_s28  ;;  %623 = vrot.lane.b32.xlu0 %v2106_v48, %s1627_s24 }
 0x15a   : > { %429 = vrot.lane.b32.xlu1 %v231_v23, %s1624_s11 }
 0x15b   : > { %v506_v39 = vpop.permute.xlu0 %505  ;;  %v826_v52 = vpop.permute.xlu2 %825 }
 0x15c   : > { %v764_v43 = vpop.permute.xlu1 %763 }
 0x15d   : > { %v971_v42 = vsel %vm963_vm6, %v954_v4, %v764_v43 }
 0x161   : > { %557 = vrot.lane.b32.xlu2 %v1736_v1, %s1628_s27  ;;  %493 = vrot.lane.b32.xlu0 %v2208_v61, %s1626_s21 }
 0x162   : > { %751 = vrot.lane.b32.xlu1 %v2023_v59, %s1631_s4  ;;  %v868_v59 = vsel %vm861_vm0, %v2081_v29, %v2147_v55 }
 0x163   : > { %v828_v53 = vpop.permute.xlu0 %827  ;;  %v438_v1 = vpop.permute.xlu2 %437  ;;  %v885_v58 = vsel %vm878_vm1, %v868_v59, %v442_v37 }
 0x164   : > { %v376_v48 = vpop.permute.xlu1 %375  ;;  %v988_v54 = vsel %vm980_vm7, %v971_v42, %v828_v53  ;;  %v902_v25 = vsel %vm895_vm2, %v885_v58, %v506_v39  ;;  %v864_v58 = vsel %vm861_vm0, %v2208_v61, %v1869_v35 }
 0x165   : > { %1393 = vmatpush.xpose.msk.msra.mxu0 %vm998_vm8, %v988_v54  ;;  %v919_v60 = vsel %vm912_vm3, %v902_v25, %v570_v12 }
 0x166   : > { %v936_v29 = vsel %vm929_vm4, %v919_v60, %v634_v38 }
 0x169   : > { %685 = vrot.lane.b32.xlu2 %v2153_v9, %s1629_s28  ;;  %815 = vrot.lane.b32.xlu0 %v2043_v5, %s1630_s29  ;;  %s1139_s28 = sshll.u32 %s183_s9, 4  ;;  %s1140_s28 = int_to_ptr.vmem [resolvable:$true] %s1139_s28 }
 0x16a   : > { %621 = vrot.lane.b32.xlu1 %v2137_v2, %s1627_s24 }
 0x16b   : > { %v440_v33 = vpop.permute.xlu0 %439  ;;  %v760_v2 = vpop.permute.xlu2 %759 }
 0x16c   : > { %v698_v56 = vpop.permute.xlu1 %697 }
 0x16d   : > { %v953_v5 = vsel %vm946_vm5, %v936_v29, %v698_v56 }
 0x171   : > { %749 = vrot.lane.b32.xlu0 %v2068_v17, %s1631_s4  ;;  %s1120_s4 = scalar_lea.sflag [#allocation3], %s2309_s7 }
 0x172   : > { %813 = vrot.lane.b32.xlu1 %v2064_v16, %s1630_s29  ;;  %v867_v16 = vsel %vm861_vm0, %v2123_v57, %v376_v48 }
 0x173   : > { %v762_v0 = vpop.permute.xlu0 %761  ;;  %v372_v27 = vpop.permute.xlu2 %371  ;;  %v884_v17 = vsel %vm878_vm1, %v867_v16, %v440_v33 }
 0x174   : > { %v568_v63 = vpop.permute.xlu1 %567  ;;  %v970_v19 = vsel %vm963_vm6, %v953_v5, %v762_v0  ;;  %v901_v8 = vsel %vm895_vm2, %v884_v17, %v504_v26  ;;  %v865_v43 = vsel %vm861_vm0, %v2175_v50, %v372_v27 }
 0x175   : > { %v987_v51 = vsel %vm980_vm7, %v970_v19, %v826_v52  ;;  %v918_v62 = vsel %vm912_vm3, %v901_v8, %v568_v63 }
 0x176   : > { %1394 = vmatpush.xpose.msk.msra.mxu0 %vm998_vm8, %v987_v51 }
 0x17b   : > { %v374_v3 = vpop.permute.xlu0 %373  ;;  %v694_v14 = vpop.permute.xlu2 %693 }
 0x17c   : > { %v632_v55 = vpop.permute.xlu1 %631  ;;  %v866_v10 = vsel %vm861_vm0, %v2153_v9, %v374_v3  ;;  %v200_v3 = vld [vmem:[%s1730_s10 + $0x8] sm:$0xff] }
 0x17d   : > { %v935_v11 = vsel %vm929_vm4, %v918_v62, %v632_v55  ;;  %v883_v24 = vsel %vm878_vm1, %v866_v10, %v438_v1  ;;  %v863_v27 = vsel %vm861_vm0, %v200_v3, %v1882_v40 }
 0x183   : > { %v696_v7 = vpop.permute.xlu0 %695  ;;  %v564_v57 = vpop.permute.xlu2 %563 }
 0x184   : > { %v502_v6 = vpop.permute.xlu1 %501  ;;  %v952_v13 = vsel %vm946_vm5, %v935_v11, %v696_v7  ;;  %v199_v11 = vld [vmem:[%s1730_s10] sm:$0xff]  ;;  %s1404_s10 = sshll.u32 %s1610_s16, 1 }
 0x185   : > { %v969_v12 = vsel %vm963_vm6, %v952_v13, %v760_v2  ;;  %v900_v32 = vsel %vm895_vm2, %v883_v24, %v502_v6  ;;  %s1135_s11 = sadd.s32 %s1606_s15, %s1404_s10  ;;  %s1516_s15 = scalar_lea.hbm %s2373_s2, 32 }
 0x186   : > { %s1405_s20 = sshll.u32 %s1135_s11, 3 }
 0x187   : > { %s1137_s27 = scalar_lea.hbm %s2373_s2, %s1405_s20 }
 0x188   : > { %s1141_s29 = sshll.u32 %s1137_s27, 4  ;;  %s1142_s29 = int_to_ptr.hbm [resolvable:$true] %s1141_s29 }
 0x189   : > { %s1510_s5 = sshra.s32 %s1142_s29, 4  ;;  %s1511_s5 = int_to_ptr.hbm [resolvable:$true] %s1510_s5 }
 0x18a   : > { %s1512_s6 = scalar_lea.hbm %s1511_s5, 8  ;;  %p1517_p2 = scmp.lt.s32.totalorder %s1511_s5, %s2373_s2 }
 0x18b   : > { %v566_v45 = vpop.permute.xlu0 %565  ;;  %v434_v21 = vpop.permute.xlu2 %433  ;;  %p1513_p13 = scmp.ne.s32.totalorder %s1511_s5, %s1512_s6  ;;  %p1518_p4 = scmp.lt.s32.totalorder %s1516_s15, %s1512_s6 }
 0x18c   : > { %v824_v15 = vpop.permute.xlu1 %823  ;;  %v917_v34 = vsel %vm912_vm3, %v900_v32, %v566_v45  ;;  %v881_v33 = vsel %vm878_vm1, %v864_v58, %v434_v21 }
 0x18d   : > { %v986_v30 = vsel %vm980_vm7, %v969_v12, %v824_v15  ;;  %p1514_p0 = pnand %p1513_p13, %p1704_p3  ;;  %p1519_p5 = por %p1518_p4, %p1517_p2 }
 0x18e   : > { %1395 = vmatpush.xpose.msk.msra.mxu0 %vm998_vm8, %v986_v30 }
 0x18f   : > { %p1515_p1 = pneg %p1514_p0 }
 0x191   : > { %p1520_p6 = pnand %p1519_p5, %p1515_p1 }
 0x193   : > { %v630_v31 = vpop.permute.xlu0 %629  ;;  %v756_v9 = vpop.permute.xlu2 %755 }
 0x194   : > { %v436_v18 = vpop.permute.xlu1 %435  ;;  %v934_v38 = vsel %vm929_vm4, %v917_v34, %v630_v31  ;;  %v997_v34 = vld [vmem:[%s2372_s1] sm:$0xff] }
 0x195   : > { %v951_v37 = vsel %vm946_vm5, %v934_v38, %v694_v14  ;;  %v882_v39 = vsel %vm878_vm1, %v865_v43, %v436_v18  ;;  %v862_v14 = vsel %vm861_vm0, %v199_v11, %v1871_v36 }
 0x19b   : > { %v500_v22 = vpop.permute.xlu0 %499  ;;  %v626_v4 = vpop.permute.xlu2 %625 }
 0x19c   : > { %v758_v20 = vpop.permute.xlu1 %757  ;;  %v899_v28 = vsel %vm895_vm2, %v882_v39, %v500_v22 }
 0x19d   : > { %v968_v23 = vsel %vm963_vm6, %v951_v37, %v758_v20  ;;  %v916_v41 = vsel %vm912_vm3, %v899_v28, %v564_v57 }
 0x1a3   : > { %v822_v26 = vpop.permute.xlu0 %821  ;;  %v496_v50 = vpop.permute.xlu2 %495 }
 0x1a4   : > { %v628_v44 = vpop.permute.xlu1 %627  ;;  %v985_v46 = vsel %vm980_vm7, %v968_v23, %v822_v26 }
 0x1a5   : > { %1396 = vmatpush.xpose.msk.msra.mxu0 %vm998_vm8, %v985_v46  ;;  %v933_v52 = vsel %vm929_vm4, %v916_v41, %v628_v44  ;;  %v1632_v44 = vmov 1.0  }
 0x1ab   : > { %v692_v49 = vpop.permute.xlu0 %691  ;;  %v818_v5 = vpop.permute.xlu2 %817 }
 0x1ac   : > { %v498_v47 = vpop.permute.xlu1 %497  ;;  %v950_v48 = vsel %vm946_vm5, %v933_v52, %v692_v49 }
 0x1ad   : > { %v967_v42 = vsel %vm963_vm6, %v950_v48, %v756_v9  ;;  %v898_v25 = vsel %vm895_vm2, %v881_v33, %v498_v47 }
 0x1b3   : > { %v562_v54 = vpop.permute.xlu0 %561  ;;  %v688_v55 = vpop.permute.xlu2 %687 }
 0x1b4   : > { %v820_v53 = vpop.permute.xlu1 %819  ;;  %v915_v60 = vsel %vm912_vm3, %v898_v25, %v562_v54 }
 0x1b5   : > { %v984_v59 = vsel %vm980_vm7, %v967_v42, %v820_v53  ;;  %v932_v29 = vsel %vm929_vm4, %v915_v60, %v626_v4 }
 0x1b6   : > { %1397 = vmatpush.xpose.msk.msra.mxu0 %vm998_vm8, %v984_v59 }
 0x1bb   : > { %v432_v56 = vpop.permute.xlu0 %431  ;;  %v558_v62 = vpop.permute.xlu2 %557 }
 0x1bc   : > { %v690_v1 = vpop.permute.xlu1 %689  ;;  %v880_v16 = vsel %vm878_vm1, %v863_v27, %v432_v56 }
 0x1bd   : > { %v949_v0 = vsel %vm946_vm5, %v932_v29, %v690_v1  ;;  %v897_v7 = vsel %vm895_vm2, %v880_v16, %v496_v50 }
 0x1c3   : > { %v754_v2 = vpop.permute.xlu0 %753  ;;  %v686_v36 = vpop.permute.xlu2 %685 }
 0x1c4   : > { %v560_v63 = vpop.permute.xlu1 %559  ;;  %v966_v19 = vsel %vm963_vm6, %v949_v0, %v754_v2 }
 0x1c5   : > { %v983_v51 = vsel %vm980_vm7, %v966_v19, %v818_v5  ;;  %v914_v8 = vsel %vm912_vm3, %v897_v7, %v560_v63 }
 0x1c6   : > { %1398 = vmatpush.xpose.msk.msra.mxu0 %vm998_vm8, %v983_v51 }
 0x1cb   : > { %v624_v61 = vpop.permute.xlu0 %623 }
 0x1cc   : > { %v430_v35 = vpop.permute.xlu1 %429  ;;  %v931_v13 = vsel %vm929_vm4, %v914_v8, %v624_v61 }
 0x1cd   : > { %v948_v15 = vsel %vm946_vm5, %v931_v13, %v688_v55  ;;  %v879_v40 = vsel %vm878_vm1, %v862_v14, %v430_v35 }
 0x1d3   : > { %v494_v6 = vpop.permute.xlu0 %493 }
 0x1d4   : > { %v752_v17 = vpop.permute.xlu1 %751  ;;  %v896_v57 = vsel %vm895_vm2, %v879_v40, %v494_v6 }
 0x1d5   : > { %v965_v45 = vsel %vm963_vm6, %v948_v15, %v752_v17  ;;  %v913_v31 = vsel %vm912_vm3, %v896_v57, %v558_v62 }
 0x1db   : > { %v816_v30 = vpop.permute.xlu0 %815 }
 0x1dc   : > { %v622_v12 = vpop.permute.xlu1 %621  ;;  %v982_v18 = vsel %vm980_vm7, %v965_v45, %v816_v30 }
 0x1dd   : > { %1399 = vmatpush.xpose.msk.msra.mxu0 %vm998_vm8, %v982_v18  ;;  %v930_v10 = vsel %vm929_vm4, %v913_v31, %v622_v12 }
 0x1de   : > { %v947_v22 = vsel %vm946_vm5, %v930_v10, %v686_v36 }
 0x1e3   : > { %v750_v24 = vpop.permute.xlu0 %749 }
 0x1e4   : > { %v814_v20 = vpop.permute.xlu1 %813  ;;  %v964_v21 = vsel %vm963_vm6, %v947_v22, %v750_v24 }
 0x1e5   : > { %v981_v32 = vsel %vm980_vm7, %v964_v21, %v814_v20 }
 0x1e6   : > { %1400 = vmatpush.xpose.msk.msra.mxu0 %vm998_vm8, %v981_v32 }
 0x1e9   : > { %1401 = vmatmul.msk.f32.vlgmr.msra.gmra.mxu0 %vm998_vm8, %v997_v34 }
 0x266   : > { %v1067_v38 = vpop.f32.mrf.mxu0 }
 0x267   : > { %1070 = vst [vmem:[%s183_s9] sm:$0xff] %v1067_v38  ;;  %1086 = vmatpush.xpose.msra.mxu1 %v1067_v38  ;;  %v1091_v37 = vmul.f32 %v1067_v38, %v1067_v38 }
 0x269   : > { %1107 = vmatpush.xpose.msra.mxu2 %v1091_v37 }
 0x26a   : > { %1087 = vmatmul.f32.vlgmr.msra.gmra.mxu1 %v1632_v44 }
 0x26c   : > { %1108 = vmatmul.f32.vlgmr.msra.gmra.mxu2 %v1632_v44 }
 0x26d   : > { %1523 = shalt.err (!%p1520_p6)
}
 0x26e   : > { %1411 = dma.vmem_to_hbm [thread:$0]  (%p1704_p3), %s1140_s28, 128, %s1142_s29, %s1120_s4   ;;  %vm1115_vm9 = vcmask 1040384   ;;  %vm1117_vm10 = vcmask 58368  }
 0x26f   : > { %s1281_s9 = sshll.u32 %s2309_s7, 1  ;;  %s1407_s20 = sshll.u32 %s1135_s11, 1 }
 0x270   : > { %s1153_s27 = scalar_lea.hbm %s2374_s3, %s1407_s20  ;;  %s190_s8 = scalar_lea.vmem [#allocation4], %s1281_s9 }
 0x271   : > { %s1155_s16 = sshll.u32 %s190_s8, 4  ;;  %s1157_s0 = sshll.u32 %s1153_s27, 4  ;;  %s1156_s16 = int_to_ptr.vmem [resolvable:$true] %s1155_s16  ;;  %s1158_s0 = int_to_ptr.hbm [resolvable:$true] %s1157_s0 }
 0x272   : > { %s1125_s28 = scalar_lea.sflag [#allocation5], %s2309_s7  ;;  %s1538_s29 = sshra.s32 %s1158_s0, 4  ;;  %s1539_s29 = int_to_ptr.hbm [resolvable:$true] %s1538_s29 }
 0x273   : > { %s1540_s11 = scalar_lea.hbm %s1539_s29, 2  ;;  %s1544_s6 = scalar_lea.hbm %s2374_s3, 8 }
 0x274   : > { %p1541_p7 = scmp.ne.s32.totalorder %s1539_s29, %s1540_s11  ;;  %p1545_p11 = scmp.lt.s32.totalorder %s1539_s29, %s2374_s3 }
 0x275   : > { %p1546_p12 = scmp.lt.s32.totalorder %s1544_s6, %s1540_s11 }
 0x276   : > { %p1542_p9 = pnand %p1541_p7, %p1704_p3 }
 0x277   : > { %p1547_p13 = por %p1546_p12, %p1545_p11 }
 0x278   : > { %p1543_p10 = pneg %p1542_p9 }
 0x27a   : > { %p1548_p0 = pnand %p1547_p13, %p1543_p10 }
 0x2e7   : > { %v1088_v26 = vpop.f32.mrf.mxu1 }
 0x2ef   : > { %v1109_v23 = vpop.f32.mrf.mxu2 }
 0x2f0   : > { %v1113_v46 = vrot.slane %v1109_v23, 7 }
 0x2f2   : > { %v1116_v9 = vsel %vm1115_vm9, %v1088_v26, %v1113_v46 }
 0x2f3   : > { %1118 = vst.msk [vmem:[%s190_s8] sm:$0x3] %vm1117_vm10, %v1116_v9 }
 0x2f4   : > { %1551 = shalt.err (!%p1548_p0)
}
 0x2f5   : > { %1412 = dma.vmem_to_hbm [thread:$0]  (%p1704_p3), %s1156_s16, 32, %s1158_s0, %s1125_s28  }
 0x2f6 PF: > { %p1422_p1 = scmp.ge.s32.totalorder %s1622_s19, 2  ;;  %s1169_s7 = sand.u32 1, %s1594_s12  }
 0x2f7   : > { %s1170_s9 = scalar_lea.sflag [#allocation3], %s1169_s7 }
 0x2f8   : > { %p1416_p2 = pnand %p1422_p1, %p1713_p8 }
 0x2fa   : > { %p1417_p4 = pneg %p1416_p2 }
 0x2fc   : > { %1585 = dma.done.wait (%p1417_p4), %s1170_s9, 128  }
 0x2fd   : > { %1587 = vsyncadd (%p1417_p4), %s1170_s9, 4294967168  ;;  %s1180_s20 = scalar_lea.sflag [#allocation5], %s1169_s7 }
 0x2fe   : > { %1589 = dma.done.wait (%p1417_p4), %s1180_s20, 32  }
 0x2ff   : > { %1591 = vsyncadd (%p1417_p4), %s1180_s20, 4294967264  ;;  %s20_s19 = sadd.s32 1, %s1622_s19   ;;  %s2379_s12 = smov %s1598_s13 }
 0x300   : > { %p17_p5 = scmp.ge.s32.totalorder %s20_s19, 6   ;;  %s2380_s13 = smov %s1602_s14 }
 0x301   : > { %s2381_s14 = smov %s1722_s30  ;;  %s2382_s15 = smov %s1614_s17 }
 0x302   : > { %s2383_s16 = smov %s1618_s18  ;;  %s2384_s17 = smov %s2387_s22 }
 0x303   : > { %s2385_s18 = smov %s2391_s23  ;;  %19 = sbr.rel (!%p17_p5) target bundleno = 9 (0x9), region = 83 }
 0x308   :  { %1186 = vsyncpa [#allocation3], 1 }
 0x309   :  { %1188 = vsyncpa [#allocation3 + $0x1], 1 }
 0x30a   :  { %1189 = vsyncpa [#allocation5], 1 }
 0x30b   :  { %1191 = vsyncpa [#allocation5 + $0x1], 1 }

</bundles_post_ra>
